<compile_context>
chip_gen: v6e
topology: v6e:2x2x1
jax: 0.10.0
libtpu: 0.0.40
codegen_flags: <defaults>
</compile_context>

<pallas_src>
import jax
import jax.numpy as jnp
from jax.experimental import pallas as pl
from jax.experimental.pallas import tpu as pltpu


def _dot_kernel(idx_ref, ut_ref, it_ref, o_ref):
    # idx_ref: (1, 2, TILE_B) int32; row 0 = user ids, row 1 = item ids.
    # ut_ref:  (D, num_users) user table (transposed), whole-array VMEM.
    # it_ref:  (D, num_items) item table (transposed), whole-array VMEM.
    # o_ref:   (1, TILE_B) f32 lane-dense logits tile.
    idx = idx_ref[...]                           # (1, 2, TILE_B)
    users = idx[0, 0:1, :]                       # (1, TILE_B)
    items = idx[0, 1:2, :]                       # (1, TILE_B)
    tile_b = idx.shape[2]
    num_users = ut_ref.shape[1]
    num_items = it_ref.shape[1]

    # One-hot gather matrices: onehot[r, b] = (idx[b] == r).
    # Built directly in the table dtype (bf16) so the matmul stays on the
    # native MXU path; out-of-range / negative indices match no row -> 0.
    onehot_u = (jax.lax.broadcasted_iota(jnp.int32, (num_users, tile_b), 0)
                == users).astype(ut_ref.dtype)   # (num_users, TILE_B)
    onehot_i = (jax.lax.broadcasted_iota(jnp.int32, (num_items, tile_b), 0)
                == items).astype(it_ref.dtype)   # (num_items, TILE_B)

    # Gather rows via the MXU: (D, rows) @ (rows, TILE_B) -> (D, TILE_B), f32 acc.
    ue_t = jnp.dot(ut_ref[...], onehot_u, preferred_element_type=jnp.float32)
    ie_t = jnp.dot(it_ref[...], onehot_i, preferred_element_type=jnp.float32)

    # Row dot product: reduce over D (sublane axis) -> lane-dense (1, TILE_B).
    o_ref[...] = jnp.sum(ue_t * ie_t, axis=0, keepdims=True)


def prepare_tables(user_emb, item_emb, table_dtype=jnp.bfloat16):
    """One-time layout prep (per parameter update), hoisted out of the hot path.

    Returns the tables transposed to (D, num_rows) and cast to `table_dtype`
    (bf16 by default: native MXU dtype on v5e/v6e/v7x; the one-hot gather is
    exact at this table precision, accumulation stays f32).
    """
    ut = jnp.asarray(user_emb, dtype=table_dtype).T   # (D, num_users)
    it = jnp.asarray(item_emb, dtype=table_dtype).T   # (D, num_items)
    return ut, it


def _round_up(x, m):
    return ((x + m - 1) // m) * m


def explicit_bayesian_forward(users, items, ut, it, *, tile_b=512):
    """Pallas implementation of ExplicitBayesian.forward.

    users, items: integer (B,) index vectors.
    ut: (D, num_users) user table, transposed (see prepare_tables).
    it: (D, num_items) item table, transposed (see prepare_tables).
    returns: (B,) f32 logits = sum(user_emb[users] * item_emb[items], -1).
    """
    B = users.shape[0]
    D, num_users = ut.shape
    _, num_items = it.shape

    users = users.astype(jnp.int32)
    items = items.astype(jnp.int32)

    # tile_b: tuned default 512 (amortizes per-step overhead, fills the MXU N
    # dim, lane-dense unmasked stores), clamped to the 128-padded batch so toy
    # batches don't pad to 512.  On v7x prefer num_tiles >= 2 so both
    # TensorCores get work.
    tile_b_eff = min(tile_b, _round_up(max(B, 1), 128))
    num_tiles = pl.cdiv(B, tile_b_eff)
    b_pad = num_tiles * tile_b_eff
    pad = b_pad - B

    # Padding rows index row 0 (always valid); they are sliced off below.
    users_p = jnp.pad(users, (0, pad)).reshape(num_tiles, tile_b_eff)
    items_p = jnp.pad(items, (0, pad)).reshape(num_tiles, tile_b_eff)
    idx_p = jnp.stack([users_p, items_p], axis=1)     # (num_tiles, 2, tile_b)

    itemsize_t = jnp.dtype(ut.dtype).itemsize
    table_bytes = (ut.size + it.size) * itemsize_t

    # VMEM budget: resident tables (single-buffered) + one-hot intermediates +
    # gathered f32 tiles + double-buffered index/output tiles, with headroom.
    onehot_bytes = (num_users + num_items) * tile_b_eff * itemsize_t
    gathered_bytes = 2 * D * tile_b_eff * 4
    io_bytes = 2 * (2 * tile_b_eff * 4) * 2 + 2 * (tile_b_eff * 4)
    vmem_limit = int(2 * (table_bytes + onehot_bytes + gathered_bytes + io_bytes)
                     + (8 << 20))
    vmem_limit = min(vmem_limit, 96 << 20)

    cost = pl.CostEstimate(
        flops=2 * b_pad * D * (num_users + num_items) + 2 * b_pad * D,
        transcendentals=0,
        bytes_accessed=int(table_bytes) + b_pad * 4 * 3,
    )

    out = pl.pallas_call(
        _dot_kernel,
        out_shape=jax.ShapeDtypeStruct((num_tiles, tile_b_eff), jnp.float32),
        grid_spec=pltpu.PrefetchScalarGridSpec(
            num_scalar_prefetch=0,
            grid=(num_tiles,),
            in_specs=[
                # Packed index tile: one small DMA per step.
                pl.BlockSpec((1, 2, tile_b_eff), lambda t: (t, 0, 0)),
                # Tables: whole-array, VMEM-resident, single-buffered.
                pl.BlockSpec(memory_space=pltpu.MemorySpace.VMEM),
                pl.BlockSpec(memory_space=pltpu.MemorySpace.VMEM),
            ],
            out_specs=pl.BlockSpec((1, tile_b_eff), lambda t: (t, 0)),
        ),
        compiler_params=pltpu.CompilerParams(
            dimension_semantics=("parallel",),
            vmem_limit_bytes=vmem_limit,
        ),
        cost_estimate=cost,
    )(idx_p, ut, it)

    return out.reshape(b_pad)[:B]


if __name__ == "__main__":
    key = jax.random.PRNGKey(0)
    k_item, k_user, k_u_idx, k_i_idx = jax.random.split(key, 4)

    num_users = 16
    num_items = 12      # rows of item_features ("num_looks" plays no shape role)
    emb_dim = 32
    batch = 8

    # Deterministic "parameters":
    #   item_embeddings: frozen pretrained table (item_features)
    #   user_embeddings: nn.Embedding default init ~ N(0, 1)
    item_features = jax.random.normal(k_item, (num_items, emb_dim), dtype=jnp.float32)
    user_weight = jax.random.normal(k_user, (num_users, emb_dim), dtype=jnp.float32)

    users = jax.random.randint(k_u_idx, (batch,), 0, num_users, dtype=jnp.int32)
    items = jax.random.randint(k_i_idx, (batch,), 0, num_items, dtype=jnp.int32)

    # One-time layout prep (outside the per-call hot path).
    ut, it = prepare_tables(user_weight, item_features)

    logits = explicit_bayesian_forward(users, items, ut, it)
    logits = jax.block_until_ready(logits)

    # Pure-JAX reference at the same (bf16) table precision, f32 accumulation.
    ue_ref = ut.T[users].astype(jnp.float32)
    ie_ref = it.T[items].astype(jnp.float32)
    ref = jnp.sum(ue_ref * ie_ref, axis=-1)

    assert logits.shape == (batch,)
    assert jnp.allclose(logits, ref, atol=1e-4, rtol=1e-4), (logits, ref)

    print("KERNEL_OK")
</pallas_src>

<mosaic_0001>
module attributes {stable_mosaic.version = 11 : i64} {
  func.func @_dot_kernel(%arg0: i32, %arg1: memref<1x2x128xi32, #tpu.memory_space<vmem>>, %arg2: memref<32x16xbf16, #tpu.memory_space<vmem>>, %arg3: memref<32x12xbf16, #tpu.memory_space<vmem>>, %arg4: memref<1x128xf32, #tpu.memory_space<vmem>>) attributes {dimension_semantics = [#tpu.dimension_semantics<parallel>], iteration_bounds = array<i64: 1>, scalar_prefetch = 0 : i64, scratch_operands = 0 : i64, tpu.core_type = #tpu.core_type<tc>, window_params = [{transform_indices = @transform_0, window_bounds = array<i64: 1, 2, 128>}, {pipeline_mode = #tpu.pipeline_mode<synchronous>, transform_indices = @transform_1, window_bounds = array<i64: 32, 16>}, {pipeline_mode = #tpu.pipeline_mode<synchronous>, transform_indices = @transform_2, window_bounds = array<i64: 32, 12>}, {transform_indices = @transform_3, window_bounds = array<i64: 1, 128>}]} {
    %c0 = arith.constant 0 : index
    %c0_0 = arith.constant 0 : index
    %c0_1 = arith.constant 0 : index
    %0 = vector.load %arg1[%c0, %c0_0, %c0_1] : memref<1x2x128xi32, #tpu.memory_space<vmem>>, vector<1x2x128xi32>
    %1 = vector.extract_strided_slice %0 {offsets = [0, 0, 0], sizes = [1, 1, 128], strides = [1, 1, 1]} : vector<1x2x128xi32> to vector<1x1x128xi32>
    %2 = vector.shape_cast %1 : vector<1x1x128xi32> to vector<1x128xi32>
    %3 = vector.extract_strided_slice %0 {offsets = [0, 1, 0], sizes = [1, 1, 128], strides = [1, 1, 1]} : vector<1x2x128xi32> to vector<1x1x128xi32>
    %4 = vector.shape_cast %3 : vector<1x1x128xi32> to vector<1x128xi32>
    %5 = tpu.iota {dimensions = array<i32: 0>} : vector<16x128xi32>
    %6 = vector.broadcast %2 : vector<1x128xi32> to vector<16x128xi32>
    %7 = arith.cmpi eq, %5, %6 : vector<16x128xi32>
    %8 = arith.extui %7 : vector<16x128xi1> to vector<16x128xi32>
    %9 = arith.sitofp %8 : vector<16x128xi32> to vector<16x128xf32>
    %10 = arith.truncf %9 : vector<16x128xf32> to vector<16x128xbf16>
    %11 = tpu.iota {dimensions = array<i32: 0>} : vector<12x128xi32>
    %12 = vector.broadcast %4 : vector<1x128xi32> to vector<12x128xi32>
    %13 = arith.cmpi eq, %11, %12 : vector<12x128xi32>
    %14 = arith.extui %13 : vector<12x128xi1> to vector<12x128xi32>
    %15 = arith.sitofp %14 : vector<12x128xi32> to vector<12x128xf32>
    %16 = arith.truncf %15 : vector<12x128xf32> to vector<12x128xbf16>
    %c0_2 = arith.constant 0 : index
    %c0_3 = arith.constant 0 : index
    %17 = vector.load %arg2[%c0_2, %c0_3] : memref<32x16xbf16, #tpu.memory_space<vmem>>, vector<32x16xbf16>
    %cst = arith.constant dense<0.000000e+00> : vector<32x128xf32>
    %18 = tpu.matmul %17, %10, %cst {dimension_numbers = #tpu.dot_dimension_numbers<[1], [0], [0], [1], [0, 0, 1, 1], [], []>} : vector<32x16xbf16>, vector<16x128xbf16>, vector<32x128xf32> -> vector<32x128xf32>
    %c0_4 = arith.constant 0 : index
    %c0_5 = arith.constant 0 : index
    %19 = vector.load %arg3[%c0_4, %c0_5] : memref<32x12xbf16, #tpu.memory_space<vmem>>, vector<32x12xbf16>
    %cst_6 = arith.constant dense<0.000000e+00> : vector<32x128xf32>
    %20 = tpu.matmul %19, %16, %cst_6 {dimension_numbers = #tpu.dot_dimension_numbers<[1], [0], [0], [1], [0, 0, 1, 1], [], []>} : vector<32x12xbf16>, vector<12x128xbf16>, vector<32x128xf32> -> vector<32x128xf32>
    %21 = arith.mulf %18, %20 : vector<32x128xf32>
    %cst_7 = arith.constant dense<0.000000e+00> : vector<128xf32>
    %22 = vector.multi_reduction <add>, %21, %cst_7 [0] : vector<32x128xf32> to vector<128xf32>
    %23 = vector.shape_cast %22 : vector<128xf32> to vector<1x128xf32>
    %c0_8 = arith.constant 0 : index
    %c0_9 = arith.constant 0 : index
    %24 = vector.load %arg4[%c0_8, %c0_9] : memref<1x128xf32, #tpu.memory_space<vmem>>, vector<1x128xf32>
    tpu.vector_store %arg4[%c0_8, %c0_9], %23 {strides = array<i32>} : memref<1x128xf32, #tpu.memory_space<vmem>>, vector<1x128xf32>,
    return
  }
  func.func @transform_0(%arg0: i32) -> (i32, i32, i32) {
    %c0_i32 = arith.constant 0 : i32
    %c0_i32_0 = arith.constant 0 : i32
    %c0_i32_1 = arith.constant 0 : i32
    return %arg0, %c0_i32, %c0_i32_0 : i32, i32, i32
  }
  func.func @transform_1(%arg0: i32) -> (i32, i32) {
    %c0_i32 = arith.constant 0 : i32
    %c0_i32_0 = arith.constant 0 : i32
    %c0_i32_1 = arith.constant 0 : i32
    return %c0_i32, %c0_i32_0 : i32, i32
  }
  func.func @transform_2(%arg0: i32) -> (i32, i32) {
    %c0_i32 = arith.constant 0 : i32
    %c0_i32_0 = arith.constant 0 : i32
    %c0_i32_1 = arith.constant 0 : i32
    return %c0_i32, %c0_i32_0 : i32, i32
  }
  func.func @transform_3(%arg0: i32) -> (i32, i32) {
    %c0_i32 = arith.constant 0 : i32
    %c0_i32_0 = arith.constant 0 : i32
    return %arg0, %c0_i32 : i32, i32
  }
}

</mosaic_0001>

<bundles_post_ra>
// kernel: tpu_custom_call.1
= control target key start
LH: loop header
LB: loop body
LE: loop exit
PB: predicated region body
PF: predicated region fallthrough
CT: control target
= control target key end

     0   :  { %v17_v0 = vlaneseq  ;;  %vm56_vm0 = vcmask 130048   ;;  %vm126_vm1 = vcmask 97280   ;;  %s321_s0 = inlined_call_operand.vmem [shape: s32[1,2,128], index: 0, kind: input, shape index: {}]   ;;  %s322_s1 = inlined_call_operand.vmem [shape: bf16[32,16], index: 1, kind: input, shape index: {}]   ;;  %s323_s2 = inlined_call_operand.vmem [shape: bf16[32,12], index: 2, kind: input, shape index: {}]   ;;  %s324_s3 = inlined_call_operand.hbm [shape: f32[1,128], index: 3, kind: output, shape index: {}]  }
   0x1   :  { %v16_v1 = vld [vmem:[%s321_s0] sm:$0x3] }
   0x2   :  { %v250_v2 = vld [vmem:[%s322_s1] sm:$0xff]   ;;  %v18_v3 = vshrl.u32 %v17_v0, 7 }
   0x3   :  { %236 = vmatprep.mubr.msk.bf16.mxu0 %vm56_vm0, %v250_v2  ;;  %v252_v4 = vld [vmem:[%s323_s2] sm:$0xff]  }
   0x4   :  { %v19_v5 = vadd.s32 8, %v18_v3  ;;  %v22_v6 = vsub.s32 0, %v18_v3  ;;  %v33_v7 = vsub.s32 1, %v18_v3  ;;  %242 = vmatprep.mubr.msk.bf16.mxu1 %vm126_vm1, %v252_v4 }
   0x5   :  { %8 = vsyncpa [#allocation3], 0  ;;  %v276_v10 = vmov 0.0   ;;  %vm133_vm7 = vcmask 1045504   ;;  %v277_v13 = vmov 1.0|1.0  }
   0x6   :  { %v23_v8 = vrot.slane %v16_v1, %v22_v6  ;;  %v34_v9 = vrot.slane %v16_v1, %v33_v7  ;;  %v251_v15 = vld [vmem:[%s322_s1 + $0x8] sm:$0xff]   ;;  %s278_s1 = smov [#allocation2]  }
   0x7   :  { %v253_v17 = vld [vmem:[%s323_s2 + $0x8] sm:$0xff]   ;;  %s206_s2 = sshll.u32 %s278_s1, 4  ;;  %s207_s2 = int_to_ptr.vmem [resolvable:$true] %s206_s2 }
   0x8   :  { %vm24_vm2 = vcmp.eq.s32.totalorder %v18_v3, %v23_v8  ;;  %vm25_vm3 = vcmp.eq.s32.totalorder %v19_v5, %v23_v8  ;;  %vm35_vm4 = vcmp.eq.s32.totalorder %v18_v3, %v34_v9  ;;  %vm36_vm5 = vcmp.eq.s32.totalorder %v19_v5, %v34_v9  ;;  %s254_s21 = scalar_lea.vmem %s207_s2, 16  ;;  %s258_s22 = scalar_lea.vmem %s207_s2, 32 }
   0x9   :  { %vm220_vm6 = vmpackc.low %vm25_vm3, %vm24_vm2  ;;  %v216_v11 = vsel %vm35_vm4, 1.0, %v276_v10  ;;  %v217_v12 = vsel %vm36_vm5, 1.0, %v276_v10  ;;  %p255_p0 = scmp.ne.s32.totalorder %s207_s2, %s254_s21  ;;  %p259_p1 = scmp.lt.s32.totalorder %s207_s2, %s207_s2 }
   0xa   :  { %234 = vmatprep.subr.msk.bf16.mxu0 %vm220_vm6, %v277_v13  ;;  %v41_v14 = vpack.c.bf16 %v217_v12, %v216_v11  ;;  %p260_p2 = scmp.lt.s32.totalorder %s258_s22, %s254_s21 }
   0xb   :  { %235 = vmatpush3.bf16.msk.msra.mxu0 %vm220_vm6, %v277_v13 }
   0xc   :  { %246 = vmatprep.subr.msk.bf16.mxu1 %vm133_vm7, %v41_v14  ;;  %v135_v16 = vsel %vm133_vm7, %v41_v14, 0  ;;  %p261_p3 = por %p260_p2, %p259_p1 }
   0xd   :  { %241 = vmatpush3.bf16.msra.mxu1 %v135_v16 }
   0xe   :  { %237 = vmatmul.mubr.msk.bf16.vlgmr.msra.gmra.mxu0 %vm56_vm0, %v251_v15  ;;  %p262_p4 = pnand %p261_p3, %p255_p0 }
  0x10   :  { %243 = vmatmul.mubr.msk.bf16.vlgmr.msra.gmra.mxu1 %vm126_vm1, %v253_v17 }
  0xce   :  { %v238_v18 = vpop.f32.mrf.mxu0 }
  0xd0   :  { %v97_v19 = vpop.f32.mrf.mxu0  ;;  %v244_v20 = vpop.f32.mrf.mxu1 }
  0xd1   :  { %v188_v28 = vmul.f32 %v244_v20, %v238_v18 }
  0xd2   :  { %v239_v21 = vpop.f32.mrf.mxu0  ;;  %v171_v22 = vpop.f32.mrf.mxu1 }
  0xd3   :  { %v186_v26 = vmul.f32 %v171_v22, %v97_v19 }
  0xd4   :  { %v245_v23 = vpop.f32.mrf.mxu1  ;;  %v100_v24 = vpop.f32.mrf.mxu0 }
  0xd5   :  { %v189_v30 = vmul.f32 %v245_v23, %v239_v21 }
  0xd6   :  { %v174_v25 = vpop.f32.mrf.mxu1 }
  0xd7   :  { %v187_v27 = vmul.f32 %v174_v25, %v100_v24 }
  0xd9   :  { %v190_v29 = vadd.f32 %v187_v27, %v186_v26 }
  0xdb   :  { %v191_v31 = vadd.f32 %v190_v29, %v188_v28 }
  0xdd   :  { %v192_v32 = vadd.f32 %v191_v31, %v189_v30 }
  0xdf   :  { %v193_v33 = vrot.slane %v192_v32, 4 }
  0xe1   :  { %v194_v34 = vadd.f32 %v193_v33, %v192_v32 }
  0xe3   :  { %v195_v35 = vrot.slane %v194_v34, 2 }
  0xe5   :  { %v196_v36 = vadd.f32 %v195_v35, %v194_v34 }
  0xe7   :  { %v197_v37 = vrot.slane %v196_v36, 1 }
  0xe9   :  { %v198_v38 = vadd.f32 %v197_v37, %v196_v36 }
  0xeb   :  { %199 = vst [vmem:[#allocation2] sm:$0x1] %v198_v38 }
  0xec   :  { %265 = shalt.err (!%p262_p4)
}
  0xed   :  { %209 = dma.vmem_to_hbm [thread:$0]  %s207_s2, 16, %s324_s3, [#allocation3]  }
  0xee   :  { %274 = dma.done.wait [#allocation3], 16  }
  0xef   :  { %275 = vsyncadd [#allocation3], 4294967280 }
  0xf0   :  { %213 = vsyncpa [#allocation3], 1 }

</bundles_post_ra>
